<compile_context>
chip_gen: v6e
topology: v6e:2x2x1
jax: 0.10.0
libtpu: 0.0.40
codegen_flags: <defaults>
</compile_context>

<pallas_src>
import functools

import numpy as np
import jax
import jax.numpy as jnp
from jax.experimental import pallas as pl
from jax.experimental.pallas import tpu as pltpu


# ----------------------------------------------------------------------------
# Parameter init (mirrors torchradon.ramp_filter exactly, in float64)
# ----------------------------------------------------------------------------
def ramp_filter_np(size: int) -> np.ndarray:
    image_n = np.concatenate(
        [np.arange(1, size // 2 + 1, 2, dtype=np.int64),
         np.arange(size // 2 - 1, 0, -2, dtype=np.int64)])
    image_filter = np.zeros(size, dtype=np.float64)
    image_filter[0] = 0.25
    image_filter[1::2] = -1.0 / (np.pi * image_n) ** 2
    fourier_filter = np.fft.fft(image_filter)
    return 2.0 * fourier_filter.real


# ----------------------------------------------------------------------------
# Fused real filter operator
# ----------------------------------------------------------------------------
@functools.lru_cache(maxsize=None)
def _dft_bases_np(n: int):
    """Host-cached symmetric cosine / sine DFT basis matrices (float64)."""
    k = np.arange(n)
    ang = 2.0 * np.pi * np.outer(k, k) / n
    return np.cos(ang), np.sin(ang)


def fuse_filter_operator(filt: jax.Array, n: int, dtype) -> jax.Array:
    """Fuse the learnable per-frequency filter into one real (N, N) operator."""
    cos_np, sin_np = _dft_bases_np(n)
    cos_m = jnp.asarray(cos_np, dtype=jnp.float32)
    sin_m = jnp.asarray(sin_np, dtype=jnp.float32)
    f = filt.reshape(n, 1).astype(jnp.float32)          # scales rows of the bases
    fused = (cos_m @ (f * cos_m) + sin_m @ (f * sin_m)) * jnp.float32(1.0 / n)
    return fused.astype(dtype)


# ----------------------------------------------------------------------------
# Kernel: one MXU matmul per (N, A_TILE) tile
# ----------------------------------------------------------------------------
def _fused_filter_kernel(m_ref, x_ref, o_ref):
    # m_ref: (N, N)       fused operator, constant across the grid
    # x_ref: (N, A_TILE)  tile of the sinogram (N = sublanes, A = lanes)
    # o_ref: (N, A_TILE)  output tile in the input dtype
    x = x_ref[...]
    m = m_ref[...]
    if x.dtype != m.dtype:           # only for dtypes other than f32 / bf16
        x = x.astype(m.dtype)
    o_ref[...] = jnp.dot(m, x, preferred_element_type=jnp.float32).astype(o_ref.dtype)


# ----------------------------------------------------------------------------
# Tiling plan / VMEM budgeting
# ----------------------------------------------------------------------------
def _plan_lane_tiling(n: int, a: int, x_itemsize: int, m_itemsize: int):
    """Return (a_tile, a_padded). Pads A only when unavoidable."""
    budget = 24 << 20                      # pipeline-buffer budget (safe for v7x 64 MiB)
    m_cost = 2 * n * n * m_itemsize        # M is double-buffered but DMA'd once (const index)
    per_lane = 4 * n * x_itemsize          # 2 input + 2 output buffers per lane column
    cap = max((budget - m_cost) // per_lane, 128)
    target = max((2 << 20) // max(n * x_itemsize, 1), 128)   # >= ~2 MiB per input buffer
    desired = int(min(max(target, 128), cap, 4096))
    desired = max((desired // 128) * 128, 128)

    if a <= desired:
        return a, a                        # full-extent A block, no padding
    if a % 128 == 0:
        t = desired
        while t > 128 and a % t != 0:      # largest multiple-of-128 divisor of A <= desired
            t -= 128
        return t, a
    if m_cost + per_lane * a <= budget:
        return a, a                        # full-extent block still fits -> avoid padding
    # Rare: A large and not a multiple of 128 -> pad A (one extra pass over the pad only).
    t = desired
    return t, t * (-(-a // t))


# ----------------------------------------------------------------------------
# Forward wrapper
# ----------------------------------------------------------------------------
def learnable_filter_forward(x: jax.Array, filt: jax.Array,
                             fused_op: jax.Array | None = None) -> jax.Array:
    """x: (B, C, N, A) real float; filt: (N, 1) real float. Returns (B, C, N, A)."""
    B, C, N, A = x.shape
    assert filt.size == N, "filter must have one entry per detector frequency"

    x_itemsize = np.dtype(x.dtype).itemsize
    m_dtype = jnp.bfloat16 if x.dtype == jnp.bfloat16 else jnp.float32
    m_itemsize = np.dtype(m_dtype).itemsize

    if fused_op is None:
        fused_op = fuse_filter_operator(filt, N, m_dtype)

    a_tile, a_pad = _plan_lane_tiling(N, A, x_itemsize, m_itemsize)
    xp = x if a_pad == A else jnp.pad(x, ((0, 0), (0, 0), (0, 0), (0, a_pad - A)))
    grid = (B, C, a_pad // a_tile)

    # Explicit VMEM budget: M double buffer + double-buffered in/out tiles.
    vmem_bytes = 2 * N * N * m_itemsize + 4 * N * a_tile * x_itemsize
    vmem_limit = int(min(max(vmem_bytes * 5 // 4 + (2 << 20), 32 << 20), 48 << 20))

    L = B * C * A
    cost = pl.CostEstimate(
        flops=2 * N * N * L,
        transcendentals=0,
        bytes_accessed=N * L * 2 * x_itemsize + N * N * m_itemsize,
    )

    out = pl.pallas_call(
        _fused_filter_kernel,
        out_shape=jax.ShapeDtypeStruct((B, C, N, a_pad), x.dtype),
        grid_spec=pltpu.PrefetchScalarGridSpec(
            num_scalar_prefetch=0,
            grid=grid,
            in_specs=[
                # Constant operator: index never changes -> DMA'd only once.
                pl.BlockSpec((N, N), lambda b, c, a: (0, 0)),
                # Transpose-free (N, A_TILE) view: leading dims squeezed.
                pl.BlockSpec((None, None, N, a_tile), lambda b, c, a: (b, c, 0, a)),
            ],
            out_specs=pl.BlockSpec((None, None, N, a_tile),
                                   lambda b, c, a: (b, c, 0, a)),
        ),
        compiler_params=pltpu.CompilerParams(
            dimension_semantics=("parallel", "parallel", "parallel"),
            vmem_limit_bytes=vmem_limit),
        cost_estimate=cost,
    )(fused_op, xp)

    return out if a_pad == A else out[..., :A]


# ----------------------------------------------------------------------------
# Self-test
# ----------------------------------------------------------------------------
if __name__ == "__main__":
    # Small shapes consistent with the module: sinogram (B, C, N, A),
    # filter_size == N (the FFT axis, PyTorch dim 2).
    B, C, N, A = 2, 4, 16, 16

    key = jax.random.PRNGKey(0)
    x = jax.random.normal(key, (B, C, N, A), dtype=jnp.float32)

    # Deterministic parameter init: ramp_filter(filter_size).view(-1, 1)
    filt = jnp.asarray(ramp_filter_np(N).reshape(-1, 1), dtype=jnp.float32)

    y = learnable_filter_forward(x, filt)
    y = jax.block_until_ready(y)

    # Reference (plain JAX FFT path, mirrors the PyTorch forward exactly).
    xf = jnp.fft.fft(x.astype(jnp.float32), axis=2)
    ref = jnp.real(jnp.fft.ifft(xf * filt[None, None, :, :], axis=2)).astype(x.dtype)

    assert y.shape == (B, C, N, A) and y.dtype == x.dtype
    np.testing.assert_allclose(np.asarray(y), np.asarray(ref), atol=2e-4, rtol=2e-4)

    print("KERNEL_OK")
</pallas_src>

<mosaic_0001>
module attributes {stable_mosaic.version = 11 : i64} {
  func.func @_fused_filter_kernel(%arg0: i32, %arg1: i32, %arg2: i32, %arg3: memref<16x16xf32, #tpu.memory_space<vmem>>, %arg4: memref<1x1x16x16xf32, #tpu.memory_space<vmem>>, %arg5: memref<1x1x16x16xf32, #tpu.memory_space<vmem>>) attributes {dimension_semantics = [#tpu.dimension_semantics<parallel>, #tpu.dimension_semantics<parallel>, #tpu.dimension_semantics<parallel>], iteration_bounds = array<i64: 2, 4, 1>, scalar_prefetch = 0 : i64, scratch_operands = 0 : i64, tpu.core_type = #tpu.core_type<tc>, window_params = [{pipeline_mode = #tpu.pipeline_mode<synchronous>, transform_indices = @transform_0, window_bounds = array<i64: 16, 16>}, {transform_indices = @transform_1, window_bounds = array<i64: 1, 1, 16, 16>}, {transform_indices = @transform_2, window_bounds = array<i64: 1, 1, 16, 16>}]} {
    %c0 = arith.constant 0 : index
    %c0_0 = arith.constant 0 : index
    %c0_1 = arith.constant 0 : index
    %c0_2 = arith.constant 0 : index
    %0 = vector.load %arg4[%c0, %c0_0, %c0_1, %c0_2] : memref<1x1x16x16xf32, #tpu.memory_space<vmem>>, vector<1x1x16x16xf32>
    %1 = vector.shape_cast %0 : vector<1x1x16x16xf32> to vector<16x16xf32>
    %c0_3 = arith.constant 0 : index
    %c0_4 = arith.constant 0 : index
    %2 = vector.load %arg3[%c0_3, %c0_4] : memref<16x16xf32, #tpu.memory_space<vmem>>, vector<16x16xf32>
    %cst = arith.constant dense<0.000000e+00> : vector<16x16xf32>
    %3 = tpu.matmul %2, %1, %cst {dimension_numbers = #tpu.dot_dimension_numbers<[1], [0], [0], [1], [0, 0, 1, 1], [], []>} : vector<16x16xf32>, vector<16x16xf32>, vector<16x16xf32> -> vector<16x16xf32>
    %c0_5 = arith.constant 0 : index
    %c0_6 = arith.constant 0 : index
    %c0_7 = arith.constant 0 : index
    %c0_8 = arith.constant 0 : index
    %4 = vector.load %arg5[%c0_5, %c0_6, %c0_7, %c0_8] : memref<1x1x16x16xf32, #tpu.memory_space<vmem>>, vector<1x1x16x16xf32>
    %5 = vector.shape_cast %4 : vector<1x1x16x16xf32> to vector<16x16xf32>
    %6 = vector.shape_cast %3 : vector<16x16xf32> to vector<1x1x16x16xf32>
    tpu.vector_store %arg5[%c0_5, %c0_6, %c0_7, %c0_8], %6 {strides = array<i32>} : memref<1x1x16x16xf32, #tpu.memory_space<vmem>>, vector<1x1x16x16xf32>,
    return
  }
  func.func @transform_0(%arg0: i32, %arg1: i32, %arg2: i32) -> (i32, i32) {
    %c0_i32 = arith.constant 0 : i32
    %c0_i32_0 = arith.constant 0 : i32
    %c0_i32_1 = arith.constant 0 : i32
    return %c0_i32, %c0_i32_0 : i32, i32
  }
  func.func @transform_1(%arg0: i32, %arg1: i32, %arg2: i32) -> (i32, i32, i32, i32) {
    %c0_i32 = arith.constant 0 : i32
    %c0_i32_0 = arith.constant 0 : i32
    return %arg0, %arg1, %c0_i32, %arg2 : i32, i32, i32, i32
  }
  func.func @transform_2(%arg0: i32, %arg1: i32, %arg2: i32) -> (i32, i32, i32, i32) {
    %c0_i32 = arith.constant 0 : i32
    %c0_i32_0 = arith.constant 0 : i32
    return %arg0, %arg1, %c0_i32, %arg2 : i32, i32, i32, i32
  }
}

</mosaic_0001>

<bundles_post_ra>
// kernel: tpu_custom_call.1
= control target key start
LH: loop header
LB: loop body
LE: loop exit
PB: predicated region body
PF: predicated region fallthrough
CT: control target
= control target key end

     0   :  { %s929_s0 = inlined_call_operand.hbm [shape: f32[16,16], index: 0, kind: input, shape index: {}]   ;;  %s930_s1 = inlined_call_operand.hbm [shape: f32[2,4,16,16], index: 1, kind: input, shape index: {}]   ;;  %s931_s2 = inlined_call_operand.hbm [shape: f32[2,4,16,16], index: 2, kind: output, shape index: {}]  }
   0x1   :  { %938 = sst [smem:[#allocation14_spill]] %s929_s0 }
   0x2   :  { %7 = vsyncpa [#allocation3], 0 }
   0x3   :  { %8 = vsyncpa [#allocation6], 0 }
   0x4   :  { %10 = vsyncpa [#allocation6 + $0x1], 0 }
   0x5   :  { %11 = vsyncpa [#allocation4], 0 }
   0x6   :  { %13 = vsyncpa [#allocation4 + $0x1], 0  ;;  %s722_s9 = smov 0   ;;  %s724_s10 = smov 0  }
   0x7   :  { %s726_s11 = smov 0   ;;  %s728_s12 = smov 0  }
   0x8   :  { %s730_s13 = smov 0   ;;  %s732_s14 = smov 0  }
   0x9   :  { %s734_s15 = smov 0   ;;  %s736_s16 = smov 0  }
   0xa LB: > { %939 = sst [smem:[#allocation11_spill]] %s690_s14  ;;  %s419_s17 = sadd.s32 4294967295, %s698_s16   ;;  %s698_s16 = sphi %s736_s16, %s19_s16   ;;  %s694_s15 = sphi %s734_s15, %s962_s15   ;;  %s690_s14 = sphi %s732_s14, %s957_s14   ;;  %s686_s13 = sphi %s730_s13, %s961_s13   ;;  %s682_s12 = sphi %s728_s12, %s956_s12   ;;  %s678_s11 = sphi %s726_s11, %s960_s11   ;;  %s674_s10 = sphi %s724_s10, %s959_s10   ;;  %s670_s9 = sphi %s722_s9, %s958_s9  }
   0xb   : > { %s420_s18 = sadd.s32 4294967294, %s698_s16   ;;  %p83_p0 = scmp.ne.s32.totalorder %s674_s10, %s670_s9 }
   0xc   : > { %p766_p1 = scmp.eq.s32.totalorder %s419_s17, 0  ;;  %p770_p2 = scmp.eq.s32.totalorder %s419_s17, 7 }
   0xd   : > { %p117_p3 = scmp.eq.s32.totalorder %s420_s18, 7  ;;  %p421_p5 = scmp.ge.s32.totalorder %s698_s16, 1 }
   0xe   : > { %p776_p4 = por %p766_p1, %p83_p0  ;;  %p124_p7 = scmp.lt.s32.totalorder %s698_s16, 9 }
   0xf   : > { %p781_p6 = por %p117_p3, %p83_p0  ;;  %s700_s24 = smov [#allocation2]  }
  0x10   : > { %s942_s21 = scalar_select %p776_p4, 1, 0 }
  0x11   : > { %s943_s22 = scalar_select %p781_p6, 1, 0 }
  0x12   : > { %p786_p8 = pnand %p421_p5, %p124_p7  ;;  %s136_s25 = sshll.u32 %s700_s24, 4  ;;  %s137_s25 = int_to_ptr.vmem [resolvable:$true] %s136_s25 }
  0x13   : > { %944 = sst [smem:[#allocation12_spill]] %s943_s22  ;;  %s555_s26 = scalar_lea.vmem %s137_s25, 256 }
  0x14   : > { %p459_p9 = pneg %p786_p8  ;;  %p556_p12 = scmp.ne.s32.totalorder %s137_s25, %s555_s26 }
  0x15   : > { %p563_p3 = scmp.lt.s32.totalorder %s137_s25, %s137_s25  ;;  %p564_p6 = scmp.lt.s32.totalorder %s555_s26, %s555_s26 }
  0x16   : > { %p460_p10 = pnand %p459_p9, %p766_p1 }
  0x17   : > { %p565_p4 = por %p564_p6, %p563_p3 }
  0x18   : > { %p546_p11 = pneg %p460_p10 }
  0x1a   : > { %p558_p13 = pnand %p556_p12, %p546_p11 }
  0x1c   : > { %p559_p0 = pneg %p558_p13 }
  0x1e   : > { %p566_p5 = pnand %p565_p4, %p559_p0 }
  0x20   : > { %569 = shalt.err (!%p566_p5)
}
  0x21   : > { %s933_s27 = smov 128   ;;  %s934_s28 = smov 8  }
  0x22   : > { %s946_s0 = sld [smem:[#allocation14_spill]]  ;;  %s34_s3 = sadd.s32 1, %s690_s14 }
  0x23   : > { %p36_p4 = scmp.ge.s32.totalorder %s34_s3, 4  ;;  %s38_s4 = sadd.s32 1, %s694_s15 }
  0x24   : > { %s70_s5 = sadd.s32 1, %s678_s11  ;;  %p77_p6 = scmp.ne.s32.totalorder %s678_s11, %s674_s10 }
  0x25   : > { %s964_s3 = smov (%p36_p4, %s34_s3), 0  ;;  %s966_s4 = smov (!%p36_p4, %s38_s4), %s694_s15 }
  0x26   : > { %947 = sst [smem:[#allocation13_spill]] %s964_s3  ;;  %s64_s6 = ssub.s32 %s690_s14, %s964_s3 }
  0x27   : > { %p78_p7 = scmp.eq.s32.totalorder %s698_s16, 0  ;;  %p40_p9 = scmp.ge.s32.totalorder %s966_s4, 2 }
  0x28   : > { %462 = dma.hbm_to_vmem [thread:$0]  (!%p460_p10), %s946_s0, 256, %s137_s25, [#allocation3], %s933_s27, %s933_s27, %s934_s28  }
  0x29   : > { %p813_p11 = por %p770_p2, %p77_p6  ;;  %p817_p10 = por %p78_p7, %p77_p6 }
  0x2a   : > { %p472_p12 = scmp.lt.s32.totalorder %s698_s16, 8  ;;  %s968_s4 = smov (%p40_p9, %s966_s4), 0 }
  0x2b   : > { %s150_s17 = sand.u32 1, %s678_s11   ;;  %s425_s18 = sshll.u32 %s690_s14, 1 }
  0x2c   : > { %s63_s24 = ssub.s32 %s694_s15, %s968_s4  ;;  %s424_s26 = sshll.u32 %s150_s17, 4 }
  0x2d   : > { %s65_s25 = sor.u32 %s64_s6, %s63_s24  ;;  %s426_s20 = sshll.u32 %s694_s15, 3 }
  0x2e   : > { %p68_p13 = scmp.eq.s32.totalorder %s65_s25, 0  ;;  %s154_s29 = scalar_lea.vmem [#allocation5], %s424_s26 }
  0x2f   : > { %s164_s30 = sshll.u32 %s154_s29, 4  ;;  %s161_s28 = sadd.s32 %s426_s20, %s425_s18  ;;  %s165_s30 = int_to_ptr.vmem [resolvable:$true] %s164_s30 }
  0x30   : > { %s830_s27 = scalar_select %p68_p13, %s678_s11, %s70_s5  }
  0x31   : > { %s427_s0 = sshll.u32 %s161_s28, 7  ;;  %p836_p2 = pnand %p472_p12, %p817_p10 }
  0x32   : > { %s163_s6 = scalar_lea.hbm %s930_s1, %s427_s0  ;;  %s151_s24 = scalar_lea.sflag [#allocation6], %s150_s17 }
  0x33   : > { %p572_p0 = pneg %p836_p2  ;;  %s583_s25 = scalar_lea.vmem %s165_s30, 256 }
  0x34   : > { %p584_p3 = scmp.ne.s32.totalorder %s165_s30, %s583_s25  ;;  %s703_s5 = smov [#allocation5]  }
  0x35   : > { %s588_s28 = sshll.u32 %s703_s5, 4  ;;  %s589_s28 = int_to_ptr.vmem [resolvable:$false] %s588_s28 }
  0x36   : > { %p586_p5 = pnand %p584_p3, %p572_p0  ;;  %s590_s8 = scalar_lea.vmem %s589_s28, 512 }
  0x37   : > { %p591_p6 = scmp.lt.s32.totalorder %s165_s30, %s589_s28  ;;  %p592_p7 = scmp.lt.s32.totalorder %s590_s8, %s583_s25 }
  0x38   : > { %p587_p4 = pneg %p586_p5 }
  0x39   : > { %p593_p9 = por %p592_p7, %p591_p6 }
  0x3b   : > { %p594_p10 = pnand %p593_p9, %p587_p4 }
  0x3d   : > { %597 = shalt.err (!%p594_p10)
}
  0x3e   : > { %s951_s14 = smov 8   ;;  %s952_s0 = smov 128  }
  0x3f   : > { %466 = dma.hbm_to_vmem [thread:$0]  (!%p836_p2), %s163_s6, 256, %s165_s30, %s151_s24, %s952_s0, %s952_s0, %s951_s14  }
  0x40   : > { %176 = sbr.rel (%p786_p8) target bundleno = 288 (0x120), region = 28 }
  0x45   : > { %657 = dma.done.wait (%p766_p1), [#allocation3], 256  }
  0x46   : > { %659 = vsyncadd (%p766_p1), [#allocation3], 4294967040  ;;  %s857_s22 = sand.u32 1, %s674_s10   ;;  %p953_p12 = scmp.ne.s32.totalorder %s942_s21, 0 }
  0x47   : > { %s430_s3 = sshll.u32 %s857_s22, 4  ;;  %s183_s17 = scalar_lea.sflag [#allocation6], %s857_s22 }
  0x48   : > { %s186_s18 = scalar_lea.vmem [#allocation5], %s430_s3 }
  0x49   : > { %661 = dma.done.wait (%p953_p12), %s183_s17, 256  }
  0x4a   : > { %663 = vsyncadd (%p953_p12), %s183_s17, 4294967040  ;;  %vm211_vm0 = vcmask 130048   ;;  %v208_v0 = vld [vmem:[%s186_s18 + $0x8] sm:$0xff]  ;;  %v207_v1 = vld [vmem:[%s186_s18] sm:$0xff]  ;;  %s435_s19 = sshll.u32 %s682_s12, 1  ;;  %s436_s21 = sshll.u32 %s686_s13, 3 }
  0x4b   : > { %v209_v2 = vld [vmem:[#allocation2] sm:$0xff]  ;;  %444 = vmatprep.subr.mxu0 %v208_v0  ;;  %v210_v3 = vld [vmem:[#allocation2 + $0x8] sm:$0xff]  ;;  %s309_s23 = sadd.s32 %s436_s21, %s435_s19  ;;  %s206_s26 = scalar_lea.vmem [#allocation7], %s430_s3 }
  0x4c   : > { %448 = vmatprep.mubr.msk.f32.mxu0 %vm211_vm0, %v209_v2  ;;  %445 = vmatpush3.msra.mxu0 %v208_v0  ;;  %s312_s20 = sshll.u32 %s206_s26, 4  ;;  %s437_s29 = sshll.u32 %s309_s23, 7  ;;  %s869_s20 = int_to_ptr.vmem [resolvable:$true] %s312_s20 }
  0x4d   : > { %446 = vmatprep.subr.mxu0 %v207_v1  ;;  %s874_s24 = scalar_lea.hbm %s931_s2, %s437_s29  ;;  %s296_s12 = scalar_lea.sflag [#allocation4], %s857_s22 }
  0x4e   : > { %447 = vmatpush3.msra.mxu0 %v207_v1  ;;  %s598_s13 = scalar_lea.vmem %s869_s20, 256  ;;  %s704_s25 = smov [#allocation7]  }
  0x4f   : > { %449 = vmatmul.mubr.msk.f32.vlgmr.msra.gmra.mxu0 %vm211_vm0, %v210_v3  ;;  %p599_p1 = scmp.ne.s32.totalorder %s869_s20, %s598_s13  ;;  %s602_s5 = sshll.u32 %s704_s25, 4  ;;  %s603_s5 = int_to_ptr.vmem [resolvable:$false] %s602_s5 }
  0x50   : > { %s604_s28 = scalar_lea.vmem %s603_s5, 512  ;;  %p605_p2 = scmp.lt.s32.totalorder %s869_s20, %s603_s5 }
  0x51   : > { %p600_p8 = pnand %p599_p1, %p813_p11  ;;  %p606_p0 = scmp.lt.s32.totalorder %s604_s28, %s598_s13 }
  0x53   : > { %p601_p13 = pneg %p600_p8  ;;  %p607_p3 = por %p606_p0, %p605_p2 }
  0x55   : > { %p608_p5 = pnand %p607_p3, %p601_p13 }
 0x10f   : > { %v450_v4 = vpop.f32.mrf.mxu0 }
 0x110   : > { %294 = vst.msk [vmem:[%s206_s26 + $0x8] sm:$0xff] %vm211_vm0, %v450_v4 }
 0x111   : > { %v284_v5 = vpop.f32.mrf.mxu0 }
 0x112   : > { %293 = vst.msk [vmem:[%s206_s26] sm:$0xff] %vm211_vm0, %v284_v5 }
 0x113   : > { %611 = shalt.err (!%p608_p5)
}
 0x114   : > { %s612_s8 = scalar_lea.hbm %s874_s24, 256  ;;  %s616_s3 = scalar_lea.hbm %s931_s2, 2048 }
 0x115   : > { %p613_p4 = scmp.ne.s32.totalorder %s874_s24, %s612_s8  ;;  %p617_p9 = scmp.lt.s32.totalorder %s874_s24, %s931_s2 }
 0x116   : > { %p618_p10 = scmp.lt.s32.totalorder %s616_s3, %s612_s8 }
 0x117   : > { %p614_p6 = pnand %p613_p4, %p813_p11 }
 0x118   : > { %p619_p12 = por %p618_p10, %p617_p9 }
 0x119   : > { %p615_p7 = pneg %p614_p6 }
 0x11b   : > { %p620_p1 = pnand %p619_p12, %p615_p7 }
 0x11d   : > { %623 = shalt.err (!%p620_p1)
}
 0x11e   : > { %s705_s19 = smov 128   ;;  %s706_s21 = smov 8  }
 0x11f   : > { %457 = dma.vmem_to_hbm [thread:$0]  (%p813_p11), %s869_s20, 256, %s874_s24, %s296_s12, %s705_s19, %s705_s19, %s706_s21  }
 0x120 PF: > { %s954_s23 = sld [smem:[#allocation12_spill]]  ;;  %p474_p8 = scmp.ge.s32.totalorder %s698_s16, 2 }
 0x121   : > { %s327_s26 = sand.u32 1, %s670_s9  }
 0x122   : > { %s328_s29 = scalar_lea.sflag [#allocation4], %s327_s26 }
 0x126   : > { %p955_p13 = scmp.ne.s32.totalorder %s954_s23, 0 }
 0x128   : > { %p468_p2 = pnand %p474_p8, %p955_p13 }
 0x12a   : > { %p469_p0 = pneg %p468_p2 }
 0x12c   : > { %665 = dma.done.wait (%p469_p0), %s328_s29, 256  }
 0x12d   : > { %667 = vsyncadd (%p469_p0), %s328_s29, 4294967040  ;;  %s19_s16 = sadd.s32 1, %s698_s16   ;;  %s956_s12 = sld [smem:[#allocation11_spill]] }
 0x12e   : > { %p16_p3 = scmp.ge.s32.totalorder %s19_s16, 10   ;;  %s957_s14 = sld [smem:[#allocation13_spill]] }
 0x12f   : > { %s958_s9 = smov %s674_s10  ;;  %s959_s10 = smov %s678_s11 }
 0x130   : > { %s960_s11 = smov %s830_s27  ;;  %s961_s13 = smov %s694_s15 }
 0x131   : > { %s962_s15 = smov %s968_s4  ;;  %18 = sbr.rel (!%p16_p3) target bundleno = 10 (0xa), region = 78 }
 0x136   :  { %333 = vsyncpa [#allocation3], 1 }
 0x137   :  { %335 = vsyncpa [#allocation3 + $0x1], 1 }
 0x138   :  { %336 = vsyncpa [#allocation6], 1 }
 0x139   :  { %338 = vsyncpa [#allocation6 + $0x1], 1 }
 0x13a   :  { %339 = vsyncpa [#allocation4], 1 }
 0x13b   :  { %341 = vsyncpa [#allocation4 + $0x1], 1 }

</bundles_post_ra>
